<compile_context>
chip_gen: v5e
topology: v5e:2x2
jax: 0.10.0
libtpu: 0.0.40
codegen_flags: <defaults>
</compile_context>

<pallas_src>
import functools

import jax
import jax.numpy as jnp
from jax.experimental import pallas as pl
from jax.experimental.pallas import tpu as pltpu

_LANE = 128
_SUBLANE = 8
_TARGET_BLOCK_BYTES = 4 << 20    # ~4 MiB per input block (dtype-aware rows)
_VMEM_LIMIT_BYTES = 32 << 20     # 2 inputs x 2 buffers x 4 MiB = 16 MiB live


def _charbonnier_kernel(x_ref, y_ref, out_ref, *, eps, n_elem, block_rows,
                        needs_mask):
    i = pl.program_id(0)

    @pl.when(i == 0)
    def _():
        out_ref[...] = jnp.zeros_like(out_ref)

    # Native-dtype DMA; cast to f32 on the VPU (mem-bound: plenty of VPU slack).
    diff = x_ref[...].astype(jnp.float32) - y_ref[...].astype(jnp.float32)
    d2 = diff * diff + jnp.float32(eps * eps)
    if eps != 0.0:
        # Route the sqrt through the EUP slot: sqrt(d2) == d2 * rsqrt(d2),
        # safe since d2 >= eps^2 > 0 for all real contributions.
        val = d2 * jax.lax.rsqrt(d2)
    else:
        val = jnp.sqrt(d2)

    def _accumulate(v):
        # vreg-wise partial sum: (block_rows,128) -> (block_rows//8, 8, 128),
        # summed over the leading axis = pure VPU adds into the (8,128) slab.
        out_ref[...] += v.reshape(block_rows // _SUBLANE, _SUBLANE, _LANE).sum(
            axis=0)

    if needs_mask:
        last = pl.num_programs(0) - 1

        @pl.when(i < last)
        def _():
            # Full interior blocks: pure streaming accumulate (no mask tax).
            _accumulate(val)

        @pl.when(i == last)
        def _():
            # Exact tail mask; only the final block pays for it.  Row/col
            # compare (not row*128+col) avoids int32 flat-index overflow.
            full_rows = n_elem // _LANE
            rem = n_elem % _LANE
            row = (jax.lax.broadcasted_iota(jnp.int32, val.shape, 0)
                   + i * block_rows)
            keep = row < full_rows
            if rem:
                col = jax.lax.broadcasted_iota(jnp.int32, val.shape, 1)
                keep = jnp.logical_or(
                    keep, jnp.logical_and(row == full_rows, col < rem))
            # jnp.where (select), NOT multiply: overhang slots may hold
            # garbage / NaN read past the end of the padded array.
            _accumulate(jnp.where(keep, val, jnp.float32(0.0)))
    else:
        _accumulate(val)


def charbonnier_loss(x, y, eps=1e-3):
    assert x.shape == y.shape, "x and y must have the same shape"
    n_elem = x.size

    xf = x.reshape(-1)
    yf = y.reshape(-1)

    # Pad (only when necessary) up to a multiple of the (8,128) tile so a
    # lane-dense 2-D view exists; padded slots are masked inside the kernel.
    # For typical image tensors numel % 1024 == 0 and this is a no-op.
    tile_elems = _SUBLANE * _LANE
    n_padded = pl.cdiv(n_elem, tile_elems) * tile_elems
    if n_padded != n_elem:
        xf = jnp.pad(xf, (0, n_padded - n_elem))
        yf = jnp.pad(yf, (0, n_padded - n_elem))

    rows = n_padded // _LANE                        # always a multiple of 8
    x2d = xf.reshape(rows, _LANE)
    y2d = yf.reshape(rows, _LANE)

    # Dtype-aware block sizing: keep each input block at ~4 MiB in bytes so the
    # per-grid-step overhead stays small regardless of input dtype.
    dtype_bytes = max(x.dtype.itemsize, y.dtype.itemsize)
    max_block_rows = max(_SUBLANE, _TARGET_BLOCK_BYTES // (_LANE * dtype_bytes))
    block_rows = min(max_block_rows, rows)          # multiple of 8
    blocks_total = pl.cdiv(rows, block_rows)
    # Masking is needed iff the grid covers more element slots than n_elem
    # (1024-pad and/or a partial final block).  Only the last block is masked.
    needs_mask = (blocks_total * block_rows * _LANE) != n_elem

    kernel = functools.partial(
        _charbonnier_kernel, eps=float(eps), n_elem=n_elem,
        block_rows=block_rows, needs_mask=needs_mask)

    partials = pl.pallas_call(
        kernel,
        out_shape=jax.ShapeDtypeStruct((_SUBLANE, _LANE), jnp.float32),
        grid_spec=pltpu.PrefetchScalarGridSpec(
            num_scalar_prefetch=0,
            grid=(blocks_total,),
            in_specs=[
                pl.BlockSpec((block_rows, _LANE), lambda i: (i, 0)),
                pl.BlockSpec((block_rows, _LANE), lambda i: (i, 0)),
            ],
            out_specs=pl.BlockSpec((_SUBLANE, _LANE), lambda i: (0, 0)),
        ),
        compiler_params=pltpu.CompilerParams(
            dimension_semantics=("arbitrary",),
            vmem_limit_bytes=_VMEM_LIMIT_BYTES,
        ),
    )(x2d, y2d)

    # Single final cross-lane reduce of the tiny (8,128) partial-sum slab.
    return jnp.sum(partials) / jnp.float32(n_elem)


if __name__ == "__main__":
    key = jax.random.PRNGKey(0)
    kx, ky = jax.random.split(key)
    # NCHW inputs, small shapes (batch=2, channels=4, spatial=16)
    x = jax.random.normal(kx, (2, 4, 16, 16), dtype=jnp.float32)
    y = jax.random.normal(ky, (2, 4, 16, 16), dtype=jnp.float32)

    loss = jax.block_until_ready(charbonnier_loss(x, y))

    # Pure-JAX reference check
    eps = 1e-3
    diff = x - y
    ref = jnp.mean(jnp.sqrt(diff * diff + eps * eps))
    assert jnp.allclose(loss, ref, rtol=1e-5, atol=1e-6), (loss, ref)

    print("KERNEL_OK")
</pallas_src>

<mosaic_0001>
module attributes {stable_mosaic.version = 11 : i64} {
  func.func @_charbonnier_kernel(%arg0: i32, %arg1: memref<16x128xf32, #tpu.memory_space<vmem>>, %arg2: memref<16x128xf32, #tpu.memory_space<vmem>>, %arg3: memref<8x128xf32, #tpu.memory_space<vmem>>) attributes {dimension_semantics = [#tpu.dimension_semantics<arbitrary>], iteration_bounds = array<i64: 1>, scalar_prefetch = 0 : i64, scratch_operands = 0 : i64, tpu.core_type = #tpu.core_type<tc>, window_params = [{transform_indices = @transform_0, window_bounds = array<i64: 16, 128>}, {transform_indices = @transform_1, window_bounds = array<i64: 16, 128>}, {pipeline_mode = #tpu.pipeline_mode<synchronous>, transform_indices = @transform_2, window_bounds = array<i64: 8, 128>}]} {
    %c0_i32 = arith.constant 0 : i32
    %0 = arith.cmpi eq, %arg0, %c0_i32 : i32
    %1 = arith.extui %0 : i1 to i32
    %c0_i32_0 = arith.constant 0 : i32
    %2 = arith.cmpi ne, %1, %c0_i32_0 : i32
    scf.if %2 {
      %cst_9 = arith.constant 0.000000e+00 : f32
      %16 = vector.broadcast %cst_9 : f32 to vector<8x128xf32>
      %c0_10 = arith.constant 0 : index
      %c0_11 = arith.constant 0 : index
      %17 = vector.load %arg3[%c0_10, %c0_11] : memref<8x128xf32, #tpu.memory_space<vmem>>, vector<8x128xf32>
      tpu.vector_store %arg3[%c0_10, %c0_11], %16 {strides = array<i32>} : memref<8x128xf32, #tpu.memory_space<vmem>>, vector<8x128xf32>,
    } else {
    }
    %c0 = arith.constant 0 : index
    %c0_1 = arith.constant 0 : index
    %3 = vector.load %arg1[%c0, %c0_1] : memref<16x128xf32, #tpu.memory_space<vmem>>, vector<16x128xf32>
    %c0_2 = arith.constant 0 : index
    %c0_3 = arith.constant 0 : index
    %4 = vector.load %arg2[%c0_2, %c0_3] : memref<16x128xf32, #tpu.memory_space<vmem>>, vector<16x128xf32>
    %5 = arith.subf %3, %4 : vector<16x128xf32>
    %6 = arith.mulf %5, %5 : vector<16x128xf32>
    %cst = arith.constant 9.99999997E-7 : f32
    %7 = vector.broadcast %cst : f32 to vector<16x128xf32>
    %8 = arith.addf %6, %7 : vector<16x128xf32>
    %9 = math.rsqrt %8 : vector<16x128xf32>
    %10 = arith.mulf %8, %9 : vector<16x128xf32>
    %c0_4 = arith.constant 0 : index
    %c0_5 = arith.constant 0 : index
    %11 = vector.load %arg3[%c0_4, %c0_5] : memref<8x128xf32, #tpu.memory_space<vmem>>, vector<8x128xf32>
    %12 = vector.shape_cast %10 : vector<16x128xf32> to vector<2x8x128xf32>
    %cst_6 = arith.constant dense<0.000000e+00> : vector<8x128xf32>
    %13 = vector.multi_reduction <add>, %12, %cst_6 [0] : vector<2x8x128xf32> to vector<8x128xf32>
    %14 = arith.addf %11, %13 : vector<8x128xf32>
    %c0_7 = arith.constant 0 : index
    %c0_8 = arith.constant 0 : index
    %15 = vector.load %arg3[%c0_7, %c0_8] : memref<8x128xf32, #tpu.memory_space<vmem>>, vector<8x128xf32>
    tpu.vector_store %arg3[%c0_7, %c0_8], %14 {strides = array<i32>} : memref<8x128xf32, #tpu.memory_space<vmem>>, vector<8x128xf32>,
    return
  }
  func.func @transform_0(%arg0: i32) -> (i32, i32) {
    %c0_i32 = arith.constant 0 : i32
    %c0_i32_0 = arith.constant 0 : i32
    return %arg0, %c0_i32 : i32, i32
  }
  func.func @transform_1(%arg0: i32) -> (i32, i32) {
    %c0_i32 = arith.constant 0 : i32
    %c0_i32_0 = arith.constant 0 : i32
    return %arg0, %c0_i32 : i32, i32
  }
  func.func @transform_2(%arg0: i32) -> (i32, i32) {
    %c0_i32 = arith.constant 0 : i32
    %c0_i32_0 = arith.constant 0 : i32
    %c0_i32_1 = arith.constant 0 : i32
    return %c0_i32, %c0_i32_0 : i32, i32
  }
}

</mosaic_0001>

<bundles_post_ra>
// kernel: tpu_custom_call.1
= control target key start
LH: loop header
LB: loop body
LE: loop exit
PB: predicated region body
PF: predicated region fallthrough
CT: control target
= control target key end

     0   :  { %7 = vsyncpa [#allocation3], 0  ;;  %s220_s0 = inlined_call_operand.hbm [shape: f32[16,128], index: 0, kind: input, shape index: {}]   ;;  %s221_s1 = inlined_call_operand.hbm [shape: f32[16,128], index: 1, kind: input, shape index: {}]   ;;  %s222_s2 = inlined_call_operand.hbm [shape: f32[8,128], index: 2, kind: output, shape index: {}]  }
   0x1   :  { %8 = vsyncpa [#allocation6], 0 }
   0x2   :  { %9 = vsyncpa [#allocation4], 0  ;;  %s14_s11 = sshll.u32 %s220_s0, 4  ;;  %s191_s12 = smov [#allocation2]   ;;  %s15_s11 = int_to_ptr.hbm [resolvable:$true] %s14_s11 }
   0x3   :  { %s16_s13 = sshll.u32 %s191_s12, 4  ;;  %s27_s16 = sshll.u32 %s221_s1, 4  ;;  %s17_s13 = int_to_ptr.vmem [resolvable:$true] %s16_s13  ;;  %s28_s16 = int_to_ptr.hbm [resolvable:$true] %s27_s16 }
   0x4   :  { %s192_s17 = smov 128   ;;  %s193_s18 = smov 8  }
   0x5   :  { %22 = dma.hbm_to_vmem [thread:$0]  %s15_s11, 256, %s17_s13, [#allocation3], %s192_s17, %s192_s17, %s193_s18  }
   0x6   :  { %s194_s19 = smov [#allocation5]  }
   0x7   :  { %s29_s20 = sshll.u32 %s194_s19, 4  ;;  %s30_s20 = int_to_ptr.vmem [resolvable:$true] %s29_s20 }
   0x8   :  { %35 = dma.hbm_to_vmem [thread:$0]  %s28_s16, 256, %s30_s20, [#allocation6], %s192_s17, %s192_s17, %s193_s18  }
   0x9   :  { %185 = dma.done.wait [#allocation3], 256  }
   0xa   :  { %186 = vsyncadd [#allocation3], 4294967040 }
   0xb   :  { %187 = dma.done.wait [#allocation6], 256  }
   0xc   :  { %188 = vsyncadd [#allocation6], 4294967040  ;;  %v49_v0 = vld [vmem:[#allocation2] sm:$0xff]  ;;  %v50_v1 = vld [vmem:[#allocation2 + $0x8] sm:$0xff]  ;;  %s195_s0 = smov [#allocation7]   ;;  %s92_s23 = sshll.u32 %s222_s2, 4  ;;  %s93_s23 = int_to_ptr.hbm [resolvable:$true] %s92_s23 }
   0xd   :  { %v51_v2 = vld [vmem:[#allocation5] sm:$0xff]  ;;  %v52_v3 = vld [vmem:[#allocation5 + $0x8] sm:$0xff]  ;;  %s90_s1 = sshll.u32 %s195_s0, 4  ;;  %s91_s1 = int_to_ptr.vmem [resolvable:$true] %s90_s1 }
   0xe   :  { %v53_v4 = vsub.f32 %v49_v0, %v51_v2  ;;  %v54_v5 = vsub.f32 %v50_v1, %v52_v3 }
  0x10   :  { %v55_v6 = vmul.f32 %v53_v4, %v53_v4  ;;  %v56_v7 = vmul.f32 %v54_v5, %v54_v5 }
  0x12   :  { %v57_v8 = vadd.f32 1e-06, %v55_v6  ;;  %v58_v9 = vadd.f32 1e-06, %v56_v7 }
  0x14   :  { %109 = vrsqrt.f32 %v57_v8  ;;  %vm65_vm0 = vweird.f32 %v57_v8  ;;  %vm75_vm2 = vweird.f32 %v58_v9 }
  0x15   :  { %111 = vrsqrt.f32 %v58_v9 }
  0x1a   :  { %v110_v10 = vpop.eup %109 }
  0x1b   :  { %v112_v11 = vpop.eup %111  ;;  %v60_v12 = vmul.f32 %v110_v10, %v57_v8  ;;  %vm66_vm1 = vweird.f32 %v110_v10 }
  0x1c   :  { %v70_v13 = vmul.f32 %v112_v11, %v58_v9  ;;  %vm76_vm3 = vweird.f32 %v112_v11  ;;  %vm67_vm4 = vmor %vm65_vm0, %vm66_vm1 }
  0x1d   :  { %v61_v14 = vmul.f32 %v110_v10, %v60_v12  ;;  %vm77_vm5 = vmor %vm75_vm2, %vm76_vm3 }
  0x1e   :  { %v71_v15 = vmul.f32 %v112_v11, %v70_v13 }
  0x1f   :  { %v62_v16 = vmul.f32 0.5, %v61_v14 }
  0x20   :  { %v72_v17 = vmul.f32 0.5, %v71_v15 }
  0x21   :  { %v63_v18 = vsub.f32 1.5, %v62_v16 }
  0x22   :  { %v73_v19 = vsub.f32 1.5, %v72_v17 }
  0x23   :  { %v64_v20 = vmul.f32 %v110_v10, %v63_v18 }
  0x24   :  { %v74_v21 = vmul.f32 %v112_v11, %v73_v19 }
  0x25   :  { %v68_v22 = vsel %vm67_vm4, %v110_v10, %v64_v20 }
  0x26   :  { %v78_v23 = vsel %vm77_vm5, %v112_v11, %v74_v21  ;;  %v79_v24 = vmul.f32 %v68_v22, %v57_v8 }
  0x27   :  { %v80_v25 = vmul.f32 %v78_v23, %v58_v9 }
  0x29   :  { %v82_v26 = vadd.f32 %v80_v25, %v79_v24 }
  0x2b   :  { %84 = vst [vmem:[#allocation7] sm:$0xff] %v82_v26 }
  0x2c   :  { %95 = dma.vmem_to_hbm [thread:$0]  %s91_s1, 128, %s93_s23, [#allocation4]  }
  0x2d   :  { %189 = dma.done.wait [#allocation4], 128  }
  0x2e   :  { %190 = vsyncadd [#allocation4], 4294967168 }
  0x2f   :  { %100 = vsyncpa [#allocation3], 1 }
  0x30   :  { %101 = vsyncpa [#allocation6], 1 }
  0x31   :  { %102 = vsyncpa [#allocation4], 1 }

</bundles_post_ra>
